<compile_context>
chip_gen: v6e
topology: v6e:2x2x1
jax: 0.10.0
libtpu: 0.0.40
codegen_flags: <defaults>
</compile_context>

<pallas_src>
import jax
import jax.numpy as jnp
from jax.experimental import pallas as pl
from jax.experimental.pallas import tpu as pltpu

_LANE = 128
_SUBLANE = 8


def _agg_kernel(x_ref, w_ref, b_ref, out_ref):
    # x_ref  : (TB, bag*c, hw)   sublane-packed tile of batch rows
    # w_ref  : (bag*c, Np)       prefolded tile(w_feat @ w_fc / bag), lane-padded
    # b_ref  : (1, Np)           lane-padded bias
    # out_ref: (TB, Np)
    pooled = jnp.mean(x_ref[...], axis=-1)                 # lane reduce -> (TB, bag*c)
    out = jnp.dot(pooled, w_ref[...],
                  preferred_element_type=jnp.float32)      # single fused GEMM
    # TODO(synk): Dropout(0.5) is identity at inference; training-mode dropout
    # would need pltpu.prng_seed / prng_random_bits and a 2x rescale.
    out_ref[...] = (out + b_ref[...]).astype(out_ref.dtype)


def aggregation_model_forward(x, w_feat, w_fc, b_fc, *, target_tile_bytes=4 << 20):
    """x: (batch, bag, c, h, w) float32.  Returns (batch, num_outputs) float32."""
    batch, bag, c, h, w = x.shape
    num_outputs = w_fc.shape[1]
    hw = h * w
    rows = bag * c

    # ---- one-time algebraic folding (wrapper-side, negligible) -------------
    # out = mean_{bag,hw}(x) @ (w_feat @ w_fc) + b_fc ; tile over bag so the
    # kernel needs no reshape of the (TB, bag*c) pooled slab.
    w_comb = (w_feat.astype(jnp.float32) @ w_fc.astype(jnp.float32)) / bag   # (c, n_out)
    w_tiled = jnp.tile(w_comb, (bag, 1))                                     # (bag*c, n_out)

    # lane-dense output: pad num_outputs up to a multiple of 128, slice after.
    n_pad = pl.cdiv(num_outputs, _LANE) * _LANE
    w_pad = jnp.zeros((rows, n_pad), jnp.float32).at[:, :num_outputs].set(w_tiled)
    b_pad = jnp.zeros((1, n_pad), jnp.float32).at[0, :num_outputs].set(
        b_fc.astype(jnp.float32))

    # sublane-packed x layout (contiguous reshape, free).
    x_flat = x.reshape(batch, rows, hw).astype(jnp.float32)

    # ---- batch-tile sizing ---------------------------------------------------
    bytes_per_row = rows * hw * 4
    tb = max(1, min(batch, target_tile_bytes // max(1, bytes_per_row)))
    # prefer >= 2 grid steps when the input is big enough to matter (v7x: 2 TCs).
    if batch > 1 and pl.cdiv(batch, tb) < 2 and batch * bytes_per_row > (8 << 20):
        tb = pl.cdiv(batch, 2)
    # out-block second-to-last dim must be a multiple of 8 or equal to batch.
    if tb < batch:
        tb = min(batch, pl.cdiv(tb, _SUBLANE) * _SUBLANE)
    grid = (pl.cdiv(batch, tb),)

    out_padded = pl.pallas_call(
        _agg_kernel,
        out_shape=jax.ShapeDtypeStruct((batch, n_pad), jnp.float32),
        grid_spec=pltpu.PrefetchScalarGridSpec(
            num_scalar_prefetch=0,
            grid=grid,
            in_specs=[
                pl.BlockSpec((tb, rows, hw), lambda i: (i, 0, 0)),   # streamed x tile
                pl.BlockSpec((rows, n_pad), lambda i: (0, 0)),       # resident weights
                pl.BlockSpec((1, n_pad), lambda i: (0, 0)),          # resident bias
            ],
            out_specs=pl.BlockSpec((tb, n_pad), lambda i: (i, 0)),
        ),
        compiler_params=pltpu.CompilerParams(
            dimension_semantics=("parallel",)),
    )(x_flat, w_pad, b_pad)

    return out_padded[:, :num_outputs]


def reference_forward(x, w_feat, w_fc, b_fc):
    """Pure-JAX reference following the original op ordering exactly."""
    batch, bag, c, h, w = x.shape
    pooled = jnp.mean(x.reshape(batch * bag, c, h * w), axis=-1)        # (B*bag, c)
    feats = pooled @ w_feat                                             # (B*bag, D)
    feats = feats.reshape(batch, bag, -1).mean(axis=1)                  # (B, D)
    return feats @ w_fc + b_fc[None, :]                                 # (B, n_out)


if __name__ == "__main__":
    # small shapes consistent with the forward: (batch, bag, c, h, w)
    batch, bag, c, h, w = 2, 4, 4, 16, 16
    resnet_dim, num_outputs = 32, 2

    key = jax.random.PRNGKey(0)
    kx, kwf, kwc, kb = jax.random.split(key, 4)
    x = jax.random.normal(kx, (batch, bag, c, h, w), dtype=jnp.float32)
    w_feat = jax.random.normal(kwf, (c, resnet_dim), dtype=jnp.float32) * 0.1
    w_fc = jax.random.normal(kwc, (resnet_dim, num_outputs), dtype=jnp.float32) * 0.1
    b_fc = jax.random.normal(kb, (num_outputs,), dtype=jnp.float32) * 0.1

    out = aggregation_model_forward(x, w_feat, w_fc, b_fc)
    out = jax.block_until_ready(out)

    ref = reference_forward(x, w_feat, w_fc, b_fc)
    assert out.shape == (batch, num_outputs)
    assert jnp.allclose(out, ref, atol=1e-5, rtol=1e-5), (out, ref)
    print("KERNEL_OK")
</pallas_src>

<mosaic_0001>
module attributes {stable_mosaic.version = 11 : i64} {
  func.func @_agg_kernel(%arg0: i32, %arg1: memref<2x16x256xf32, #tpu.memory_space<vmem>>, %arg2: memref<16x128xf32, #tpu.memory_space<vmem>>, %arg3: memref<1x128xf32, #tpu.memory_space<vmem>>, %arg4: memref<2x128xf32, #tpu.memory_space<vmem>>) attributes {dimension_semantics = [#tpu.dimension_semantics<parallel>], iteration_bounds = array<i64: 1>, scalar_prefetch = 0 : i64, scratch_operands = 0 : i64, tpu.core_type = #tpu.core_type<tc>, window_params = [{transform_indices = @transform_0, window_bounds = array<i64: 2, 16, 256>}, {pipeline_mode = #tpu.pipeline_mode<synchronous>, transform_indices = @transform_1, window_bounds = array<i64: 16, 128>}, {pipeline_mode = #tpu.pipeline_mode<synchronous>, transform_indices = @transform_2, window_bounds = array<i64: 1, 128>}, {transform_indices = @transform_3, window_bounds = array<i64: 2, 128>}]} {
    %c0 = arith.constant 0 : index
    %c0_0 = arith.constant 0 : index
    %c0_1 = arith.constant 0 : index
    %0 = vector.load %arg1[%c0, %c0_0, %c0_1] : memref<2x16x256xf32, #tpu.memory_space<vmem>>, vector<2x16x256xf32>
    %cst = arith.constant dense<0.000000e+00> : vector<2x16xf32>
    %1 = vector.multi_reduction <add>, %0, %cst [2] : vector<2x16x256xf32> to vector<2x16xf32>
    %cst_2 = arith.constant 2.560000e+02 : f32
    %2 = vector.broadcast %cst_2 : f32 to vector<2x16xf32>
    %3 = arith.divf %1, %2 : vector<2x16xf32>
    %c0_3 = arith.constant 0 : index
    %c0_4 = arith.constant 0 : index
    %4 = vector.load %arg2[%c0_3, %c0_4] : memref<16x128xf32, #tpu.memory_space<vmem>>, vector<16x128xf32>
    %cst_5 = arith.constant dense<0.000000e+00> : vector<2x128xf32>
    %5 = tpu.matmul %3, %4, %cst_5 {dimension_numbers = #tpu.dot_dimension_numbers<[1], [0], [0], [1], [0, 0, 1, 1], [], []>} : vector<2x16xf32>, vector<16x128xf32>, vector<2x128xf32> -> vector<2x128xf32>
    %c0_6 = arith.constant 0 : index
    %c0_7 = arith.constant 0 : index
    %6 = vector.load %arg3[%c0_6, %c0_7] : memref<1x128xf32, #tpu.memory_space<vmem>>, vector<1x128xf32>
    %7 = vector.broadcast %6 : vector<1x128xf32> to vector<2x128xf32>
    %8 = arith.addf %5, %7 : vector<2x128xf32>
    %c0_8 = arith.constant 0 : index
    %c0_9 = arith.constant 0 : index
    %9 = vector.load %arg4[%c0_8, %c0_9] : memref<2x128xf32, #tpu.memory_space<vmem>>, vector<2x128xf32>
    tpu.vector_store %arg4[%c0_8, %c0_9], %8 {strides = array<i32>} : memref<2x128xf32, #tpu.memory_space<vmem>>, vector<2x128xf32>,
    return
  }
  func.func @transform_0(%arg0: i32) -> (i32, i32, i32) {
    %c0_i32 = arith.constant 0 : i32
    %c0_i32_0 = arith.constant 0 : i32
    %c0_i32_1 = arith.constant 0 : i32
    return %arg0, %c0_i32, %c0_i32_0 : i32, i32, i32
  }
  func.func @transform_1(%arg0: i32) -> (i32, i32) {
    %c0_i32 = arith.constant 0 : i32
    %c0_i32_0 = arith.constant 0 : i32
    %c0_i32_1 = arith.constant 0 : i32
    return %c0_i32, %c0_i32_0 : i32, i32
  }
  func.func @transform_2(%arg0: i32) -> (i32, i32) {
    %c0_i32 = arith.constant 0 : i32
    %c0_i32_0 = arith.constant 0 : i32
    %c0_i32_1 = arith.constant 0 : i32
    return %c0_i32, %c0_i32_0 : i32, i32
  }
  func.func @transform_3(%arg0: i32) -> (i32, i32) {
    %c0_i32 = arith.constant 0 : i32
    %c0_i32_0 = arith.constant 0 : i32
    return %arg0, %c0_i32 : i32, i32
  }
}

</mosaic_0001>

<bundles_post_ra>
// kernel: tpu_custom_call.1
= control target key start
LH: loop header
LB: loop body
LE: loop exit
PB: predicated region body
PF: predicated region fallthrough
CT: control target
= control target key end

     0   :  { %8 = vsyncpa [#allocation3], 0  ;;  %s323_s0 = inlined_call_operand.hbm [shape: f32[2,16,256], index: 0, kind: input, shape index: {}]   ;;  %s324_s1 = inlined_call_operand.hbm [shape: f32[16,128], index: 1, kind: input, shape index: {}]   ;;  %s325_s2 = inlined_call_operand.vmem [shape: f32[1,128], index: 2, kind: input, shape index: {}]   ;;  %s326_s3 = inlined_call_operand.hbm [shape: f32[2,128], index: 3, kind: output, shape index: {}]  }
   0x1   :  { %9 = vsyncpa [#allocation6], 0 }
   0x2   :  { %10 = vsyncpa [#allocation4], 0  ;;  %s282_s12 = smov [#allocation2]  }
   0x3   :  { %s16_s13 = sshll.u32 %s282_s12, 4  ;;  %s17_s13 = int_to_ptr.vmem [resolvable:$true] %s16_s13 }
   0x4   :  { %s224_s14 = scalar_lea.vmem %s17_s13, 1024  ;;  %p229_p1 = scmp.lt.s32.totalorder %s17_s13, %s17_s13 }
   0x5   :  { %p225_p0 = scmp.ne.s32.totalorder %s17_s13, %s224_s14  ;;  %p230_p2 = scmp.lt.s32.totalorder %s224_s14, %s224_s14 }
   0x7   :  { %p231_p3 = por %p230_p2, %p229_p1 }
   0x9   :  { %p232_p4 = pnand %p231_p3, %p225_p0 }
   0xb   :  { %235 = shalt.err (!%p232_p4)
}
   0xc   :  { %s283_s15 = smov 256   ;;  %s284_s16 = smov 16  }
   0xd   :  { %22 = dma.hbm_to_vmem [thread:$0]  %s323_s0, 1024, %s17_s13, [#allocation3], %s283_s15, %s283_s15, %s284_s16  }
   0xe   :  { %s285_s19 = smov [#allocation5]  }
   0xf   :  { %s28_s20 = sshll.u32 %s285_s19, 4  ;;  %s29_s20 = int_to_ptr.vmem [resolvable:$true] %s28_s20 }
  0x10   :  { %s244_s21 = scalar_lea.vmem %s29_s20, 256  ;;  %p249_p6 = scmp.lt.s32.totalorder %s29_s20, %s29_s20 }
  0x11   :  { %p245_p5 = scmp.ne.s32.totalorder %s29_s20, %s244_s21  ;;  %p250_p7 = scmp.lt.s32.totalorder %s244_s21, %s244_s21 }
  0x13   :  { %p251_p8 = por %p250_p7, %p249_p6 }
  0x15   :  { %p252_p9 = pnand %p251_p8, %p245_p5 }
  0x17   :  { %255 = shalt.err (!%p252_p9)
}
  0x18   :  { %s286_s22 = smov 128   ;;  %s287_s23 = smov 8  }
  0x19   :  { %34 = dma.hbm_to_vmem [thread:$0]  %s324_s1, 256, %s29_s20, [#allocation6], %s286_s22, %s286_s22, %s287_s23  }
  0x1a   :  { %276 = dma.done.wait [#allocation3], 1024  }
  0x1b   :  { %277 = vsyncadd [#allocation3], 4294966272 }
  0x1c   :  { %278 = dma.done.wait [#allocation6], 256  }
  0x1d   :  { %279 = vsyncadd [#allocation6], 4294967040  ;;  %v47_v0 = vld [vmem:[#allocation2 + $0x20] sm:$0xff]  ;;  %v48_v1 = vld [vmem:[#allocation2 + $0x28] sm:$0xff]  ;;  %v288_v12 = vmov 0.0   ;;  %vm289_vm0 = vmmov 0   ;;  %v81_v15 = vlaneseq }
  0x1e   :  { %v43_v2 = vld [vmem:[#allocation2] sm:$0xff]  ;;  %v57_v3 = vadd.f32 %v48_v1, %v47_v0  ;;  %v44_v4 = vld [vmem:[#allocation2 + $0x8] sm:$0xff]  ;;  %v49_v5 = vld [vmem:[#allocation2 + $0x30] sm:$0xff]  ;;  %200 = vmatprep.subr.mxu0 %v288_v12  ;;  %204 = vmatprep.mubr.msk.f32.mxu0 %vm289_vm0, %v288_v12  ;;  %vm92_vm1 = vcmask 130112   ;;  %vm103_vm2 = vcmask 1041409   ;;  %vm105_vm3 = vcmask 130048  }
  0x1f   :  { %v50_v6 = vld [vmem:[#allocation2 + $0x38] sm:$0xff]  ;;  %v51_v7 = vadd.f32 %v44_v4, %v43_v2  ;;  %v45_v8 = vld [vmem:[#allocation2 + $0x10] sm:$0xff]  ;;  %v69_v13 = vld [vmem:[#allocation5 + $0x8] sm:$0xff]  ;;  %v82_v16 = vand.u32 127, %v81_v15  ;;  %v84_v17 = vshrl.u32 %v81_v15, 7  ;;  %s290_s26 = smov [#allocation7]  }
  0x20   :  { %v46_v9 = vld [vmem:[#allocation2 + $0x18] sm:$0xff]  ;;  %58 = vadd.xlane.f32.xlu1 %v57_v3  ;;  %v60_v10 = vadd.f32 %v50_v6, %v49_v5  ;;  %v68_v14 = vld [vmem:[#allocation5] sm:$0xff]  ;;  %201 = vmatpush3.msra.mxu0 %v69_v13  ;;  %s185_s27 = sshll.u32 %s290_s26, 4  ;;  %s186_s27 = int_to_ptr.vmem [resolvable:$true] %s185_s27 }
  0x21   :  { %52 = vadd.xlane.f32.xlu0 %v51_v7  ;;  %v54_v11 = vadd.f32 %v46_v9, %v45_v8  ;;  %202 = vmatprep.subr.mxu0 %v288_v12  ;;  %v87_v18 = vadd.s32 4294967288, %v82_v16  ;;  %v85_v21 = vsub.s32 %v82_v16, %v84_v17  ;;  %v195_v36 = vld [vmem:[%s325_s2] ss:$0 sm:$0xff]  ;;  %s256_s28 = scalar_lea.vmem %s186_s27, 32  ;;  %p261_p11 = scmp.lt.s32.totalorder %s186_s27, %s186_s27 }
  0x22   :  { %203 = vmatpush3.msra.mxu0 %v68_v14  ;;  %p257_p10 = scmp.ne.s32.totalorder %s186_s27, %s256_s28  ;;  %p262_p12 = scmp.lt.s32.totalorder %s256_s28, %s256_s28 }
  0x23   :  { %v90_v23 = vsub.s32 %v87_v18, %v84_v17 }
  0x24   :  { %61 = vadd.xlane.f32.xlu1 %v60_v10  ;;  %p263_p13 = por %p262_p12, %p261_p11 }
  0x25   :  { %55 = vadd.xlane.f32.xlu0 %v54_v11 }
  0x26   :  { %p264_p0 = pnand %p263_p13, %p257_p10 }
  0xa9   :  { %v59_v19 = vpop.xlane.xlu1 %58 }
  0xaa   :  { %v53_v20 = vpop.xlane.xlu0 %52  ;;  %v66_v22 = vmul.f32 0.00390625, %v59_v19 }
  0xab   :  { %v64_v24 = vmul.f32 0.00390625, %v53_v20 }
  0xac   :  { %v97_v29 = vrot.slane %v66_v22, %v85_v21 }
  0xad   :  { %v62_v25 = vpop.xlane.xlu1 %61  ;;  %v86_v31 = vrot.slane %v64_v24, %v85_v21 }
  0xae   :  { %v67_v26 = vmul.f32 0.00390625, %v62_v25  ;;  %v56_v27 = vpop.xlane.xlu0 %55 }
  0xaf   :  { %v65_v28 = vmul.f32 0.00390625, %v56_v27 }
  0xb0   :  { %v101_v30 = vrot.slane %v67_v26, %v90_v23 }
  0xb1   :  { %v91_v32 = vrot.slane %v65_v28, %v90_v23 }
  0xb2   :  { %v102_v33 = vsel %vm92_vm1, %v101_v30, %v97_v29 }
  0xb3   :  { %v93_v34 = vsel %vm92_vm1, %v91_v32, %v86_v31 }
  0xb4   :  { %v104_v35 = vsel %vm103_vm2, %v102_v33, %v93_v34 }
  0xb5   :  { %205 = vmatmul.mubr.msk.f32.vlgmr.msra.gmra.mxu0 %vm105_vm3, %v104_v35 }
 0x175   :  { %v174_v37 = vpop.f32.mrf.mxu0 }
 0x176   :  { %v175_v38 = vadd.f32 %v195_v36, %v174_v37 }
 0x177   :  { %v206_v39 = vpop.f32.mrf.mxu0 }
 0x178   :  { %178 = vst [vmem:[#allocation7] sm:$0x3] %v175_v38 }
 0x179   :  { %267 = shalt.err (!%p264_p0)
}
 0x17a   :  { %188 = dma.vmem_to_hbm [thread:$0]  %s186_s27, 32, %s326_s3, [#allocation4]  }
 0x17b   :  { %280 = dma.done.wait [#allocation4], 32  }
 0x17c   :  { %281 = vsyncadd [#allocation4], 4294967264 }
 0x17d   :  { %192 = vsyncpa [#allocation3], 1 }
 0x17e   :  { %193 = vsyncpa [#allocation6], 1 }
 0x17f   :  { %194 = vsyncpa [#allocation4], 1 }

</bundles_post_ra>
